<compile_context>
chip_gen: v6e
topology: v6e:2x2x1
jax: 0.10.0
libtpu: 0.0.40
codegen_flags: <defaults>
</compile_context>

<pallas_src>
import jax
import jax.numpy as jnp
from jax.experimental import pallas as pl
from jax.experimental.pallas import tpu as pltpu


def _round_up(x, m):
    return ((x + m - 1) // m) * m


# ----------------------------------------------------------------------------
# Kernel: one batch tile of the full Encode -> Decode pipeline
#   (4 matmuls + 4 bias adds + 2 ReLUs), f32 accumulation, lane-dense stores.
# ----------------------------------------------------------------------------
def koopman_kernel(x_ref,
                   w1_ref, b1_ref, w2_ref, b2_ref,   # Encoder params
                   w3_ref, b3_ref, w4_ref, b4_ref,   # Decoder params
                   ic_ref, out_ref):
    mm_dtype = w1_ref.dtype          # matmul operand dtype (bf16 or f32)
    x = x_ref[...]                    # already in mm_dtype

    # ---- Encoder: Linear -> ReLU -> Linear ----
    h1 = jnp.dot(x, w1_ref[...], preferred_element_type=jnp.float32) + b1_ref[...]
    h1 = jnp.maximum(h1, 0.0)
    ic = jnp.dot(h1.astype(mm_dtype), w2_ref[...],
                 preferred_element_type=jnp.float32) + b2_ref[...]
    ic_ref[...] = ic.astype(ic_ref.dtype)

    # ---- Decoder: Linear -> ReLU -> Linear ----
    h2 = jnp.dot(ic.astype(mm_dtype), w3_ref[...],
                 preferred_element_type=jnp.float32) + b3_ref[...]
    h2 = jnp.maximum(h2, 0.0)
    out = jnp.dot(h2.astype(mm_dtype), w4_ref[...],
                  preferred_element_type=jnp.float32) + b4_ref[...]
    out_ref[...] = out.astype(out_ref.dtype)


# ----------------------------------------------------------------------------
# Wrapper: padding, tiling, pallas_call
# ----------------------------------------------------------------------------
def koopman_forward(state, params, *, matmul_dtype=jnp.bfloat16,
                    tile_b=None, vmem_budget_bytes=16 * 1024 * 1024):
    """state: (B, state_dim) f32.  Returns (ic, recon) in f32."""
    w1, b1, w2, b2, w3, b3, w4, b4 = params
    B, state_dim = state.shape
    hidden = w1.shape[1]
    latent = w2.shape[1]

    # Lane-dense / MXU-aligned feature dims.
    S = _round_up(state_dim, 128)
    H = _round_up(hidden, 128)
    L = _round_up(latent, 128)

    mm_bytes = jnp.dtype(matmul_dtype).itemsize

    # ---- batch tile selection (conservative VMEM budget, works on 64 MiB v7x
    #      VMEM and the default scoped limits of v5e/v6e without raising
    #      vmem_limit_bytes) ----
    if tile_b is None:
        weight_bytes = (S * H + H * L + L * H + H * S) * mm_bytes \
                       + 4 * (2 * H + L + S)            # f32 biases (1, N)
        tb = 512
        while tb > 8:
            act_bytes = tb * (S * mm_bytes              # x block
                              + 2 * H * 4               # h1 / h2 intermediates
                              + L * 4 + S * 4)          # ic / out blocks
            if weight_bytes + 2 * act_bytes <= vmem_budget_bytes:
                break
            tb //= 2
        tile_b = max(tb, 8)
    TB = min(tile_b, _round_up(max(B, 1), 8))           # don't over-pad tiny batches
    TB = max(_round_up(TB, 8), 8)
    Bp = _round_up(max(B, 1), TB)

    def pad2(a, r, c):
        return jnp.pad(a, ((0, r - a.shape[0]), (0, c - a.shape[1])))

    # Zero-padded, dtype-cast operands.  Zero weight rows/cols + zero bias in
    # the padded columns keep padded outputs exactly 0, so slicing recovers
    # the unpadded result.
    x_p = pad2(state, Bp, S).astype(matmul_dtype)
    w1_p = pad2(w1, S, H).astype(matmul_dtype)
    w2_p = pad2(w2, H, L).astype(matmul_dtype)
    w3_p = pad2(w3, L, H).astype(matmul_dtype)
    w4_p = pad2(w4, H, S).astype(matmul_dtype)
    b1_p = pad2(b1, 1, H).astype(jnp.float32)
    b2_p = pad2(b2, 1, L).astype(jnp.float32)
    b3_p = pad2(b3, 1, H).astype(jnp.float32)
    b4_p = pad2(b4, 1, S).astype(jnp.float32)

    grid = (Bp // TB,)

    def act_spec(cols):
        # streamed per-grid-step block along the batch axis
        return pl.BlockSpec((TB, cols), lambda i: (i, 0))

    def resident_spec(shape):
        # whole array, constant index_map -> stays resident across grid steps
        return pl.BlockSpec(shape, lambda i: tuple(0 for _ in shape))

    ins = (x_p, w1_p, b1_p, w2_p, b2_p, w3_p, b3_p, w4_p, b4_p)
    in_specs = [act_spec(S)] + [resident_spec(a.shape) for a in ins[1:]]

    out_shapes = (
        jax.ShapeDtypeStruct((Bp, L), jnp.float32),   # ic (padded)
        jax.ShapeDtypeStruct((Bp, S), jnp.float32),   # recon (padded)
    )
    out_specs = [act_spec(L), act_spec(S)]

    ic_p, out_p = pl.pallas_call(
        koopman_kernel,
        out_shape=out_shapes,
        grid_spec=pltpu.PrefetchScalarGridSpec(
            num_scalar_prefetch=0,
            grid=grid,
            in_specs=in_specs,
            out_specs=out_specs,
        ),
        compiler_params=pltpu.CompilerParams(
            dimension_semantics=("parallel",)),   # megacore sharding on v7x
    )(*ins)

    return ic_p[:B, :latent], out_p[:B, :state_dim]


# ----------------------------------------------------------------------------
# Parameter init + pure-JAX reference
# ----------------------------------------------------------------------------
def init_params(key, state_dim, hidden, latent):
    ks = jax.random.split(key, 8)

    def lin(kw, kb, fan_in, fan_out):
        bound = 1.0 / jnp.sqrt(fan_in)
        w = jax.random.uniform(kw, (fan_in, fan_out), jnp.float32, -bound, bound)
        b = jax.random.uniform(kb, (1, fan_out), jnp.float32, -bound, bound)
        return w, b

    w1, b1 = lin(ks[0], ks[1], state_dim, hidden)
    w2, b2 = lin(ks[2], ks[3], hidden, latent)
    w3, b3 = lin(ks[4], ks[5], latent, hidden)
    w4, b4 = lin(ks[6], ks[7], hidden, state_dim)
    return (w1, b1, w2, b2, w3, b3, w4, b4)


def reference_forward(state, params):
    w1, b1, w2, b2, w3, b3, w4, b4 = params
    h1 = jnp.maximum(state @ w1 + b1, 0.0)
    ic = h1 @ w2 + b2
    h2 = jnp.maximum(ic @ w3 + b3, 0.0)
    out = h2 @ w4 + b4
    return ic, out


if __name__ == "__main__":
    key = jax.random.PRNGKey(0)
    k_x, k_p = jax.random.split(key)

    B, state_dim, hidden, latent = 8, 16, 32, 8
    state = jax.random.normal(k_x, (B, state_dim), jnp.float32)
    params = init_params(k_p, state_dim, hidden, latent)

    ic_ref, recon_ref = reference_forward(state, params)

    # f32 matmul path: exact check.
    ic_f32, recon_f32 = koopman_forward(state, params, matmul_dtype=jnp.float32)
    jax.block_until_ready((ic_f32, recon_f32))
    assert jnp.allclose(ic_f32, ic_ref, atol=1e-5, rtol=1e-5)
    assert jnp.allclose(recon_f32, recon_ref, atol=1e-5, rtol=1e-5)

    # bf16 matmul-operand path (default; v6e/v7x MXU fast path): relaxed check.
    ic_bf16, recon_bf16 = koopman_forward(state, params, matmul_dtype=jnp.bfloat16)
    jax.block_until_ready((ic_bf16, recon_bf16))
    assert jnp.allclose(ic_bf16, ic_ref, atol=3e-2, rtol=3e-2)
    assert jnp.allclose(recon_bf16, recon_ref, atol=3e-2, rtol=3e-2)

    print("KERNEL_OK")
</pallas_src>

<mosaic_0001>
module attributes {stable_mosaic.version = 11 : i64} {
  func.func @koopman_kernel(%arg0: i32, %arg1: memref<8x128xf32, #tpu.memory_space<vmem>>, %arg2: memref<128x128xf32, #tpu.memory_space<vmem>>, %arg3: memref<1x128xf32, #tpu.memory_space<vmem>>, %arg4: memref<128x128xf32, #tpu.memory_space<vmem>>, %arg5: memref<1x128xf32, #tpu.memory_space<vmem>>, %arg6: memref<128x128xf32, #tpu.memory_space<vmem>>, %arg7: memref<1x128xf32, #tpu.memory_space<vmem>>, %arg8: memref<128x128xf32, #tpu.memory_space<vmem>>, %arg9: memref<1x128xf32, #tpu.memory_space<vmem>>, %arg10: memref<8x128xf32, #tpu.memory_space<vmem>>, %arg11: memref<8x128xf32, #tpu.memory_space<vmem>>) attributes {dimension_semantics = [#tpu.dimension_semantics<parallel>], iteration_bounds = array<i64: 1>, scalar_prefetch = 0 : i64, scratch_operands = 0 : i64, tpu.core_type = #tpu.core_type<tc>, window_params = [{transform_indices = @transform_0, window_bounds = array<i64: 8, 128>}, {pipeline_mode = #tpu.pipeline_mode<synchronous>, transform_indices = @transform_1, window_bounds = array<i64: 128, 128>}, {pipeline_mode = #tpu.pipeline_mode<synchronous>, transform_indices = @transform_2, window_bounds = array<i64: 1, 128>}, {pipeline_mode = #tpu.pipeline_mode<synchronous>, transform_indices = @transform_3, window_bounds = array<i64: 128, 128>}, {pipeline_mode = #tpu.pipeline_mode<synchronous>, transform_indices = @transform_4, window_bounds = array<i64: 1, 128>}, {pipeline_mode = #tpu.pipeline_mode<synchronous>, transform_indices = @transform_5, window_bounds = array<i64: 128, 128>}, {pipeline_mode = #tpu.pipeline_mode<synchronous>, transform_indices = @transform_6, window_bounds = array<i64: 1, 128>}, {pipeline_mode = #tpu.pipeline_mode<synchronous>, transform_indices = @transform_7, window_bounds = array<i64: 128, 128>}, {pipeline_mode = #tpu.pipeline_mode<synchronous>, transform_indices = @transform_8, window_bounds = array<i64: 1, 128>}, {transform_indices = @transform_9, window_bounds = array<i64: 8, 128>}, {transform_indices = @transform_10, window_bounds = array<i64: 8, 128>}]} {
    %c0 = arith.constant 0 : index
    %c0_0 = arith.constant 0 : index
    %0 = vector.load %arg1[%c0, %c0_0] : memref<8x128xf32, #tpu.memory_space<vmem>>, vector<8x128xf32>
    %c0_1 = arith.constant 0 : index
    %c0_2 = arith.constant 0 : index
    %1 = vector.load %arg2[%c0_1, %c0_2] : memref<128x128xf32, #tpu.memory_space<vmem>>, vector<128x128xf32>
    %cst = arith.constant dense<0.000000e+00> : vector<8x128xf32>
    %2 = tpu.matmul %0, %1, %cst {dimension_numbers = #tpu.dot_dimension_numbers<[1], [0], [0], [1], [0, 0, 1, 1], [], []>} : vector<8x128xf32>, vector<128x128xf32>, vector<8x128xf32> -> vector<8x128xf32>
    %c0_3 = arith.constant 0 : index
    %c0_4 = arith.constant 0 : index
    %3 = vector.load %arg3[%c0_3, %c0_4] : memref<1x128xf32, #tpu.memory_space<vmem>>, vector<1x128xf32>
    %4 = vector.broadcast %3 : vector<1x128xf32> to vector<8x128xf32>
    %5 = arith.addf %2, %4 : vector<8x128xf32>
    %cst_5 = arith.constant 0.000000e+00 : f32
    %6 = vector.broadcast %cst_5 : f32 to vector<8x128xf32>
    %7 = arith.maximumf %5, %6 : vector<8x128xf32>
    %c0_6 = arith.constant 0 : index
    %c0_7 = arith.constant 0 : index
    %8 = vector.load %arg4[%c0_6, %c0_7] : memref<128x128xf32, #tpu.memory_space<vmem>>, vector<128x128xf32>
    %cst_8 = arith.constant dense<0.000000e+00> : vector<8x128xf32>
    %9 = tpu.matmul %7, %8, %cst_8 {dimension_numbers = #tpu.dot_dimension_numbers<[1], [0], [0], [1], [0, 0, 1, 1], [], []>} : vector<8x128xf32>, vector<128x128xf32>, vector<8x128xf32> -> vector<8x128xf32>
    %c0_9 = arith.constant 0 : index
    %c0_10 = arith.constant 0 : index
    %10 = vector.load %arg5[%c0_9, %c0_10] : memref<1x128xf32, #tpu.memory_space<vmem>>, vector<1x128xf32>
    %11 = vector.broadcast %10 : vector<1x128xf32> to vector<8x128xf32>
    %12 = arith.addf %9, %11 : vector<8x128xf32>
    %c0_11 = arith.constant 0 : index
    %c0_12 = arith.constant 0 : index
    %13 = vector.load %arg10[%c0_11, %c0_12] : memref<8x128xf32, #tpu.memory_space<vmem>>, vector<8x128xf32>
    tpu.vector_store %arg10[%c0_11, %c0_12], %12 {strides = array<i32>} : memref<8x128xf32, #tpu.memory_space<vmem>>, vector<8x128xf32>,
    %c0_13 = arith.constant 0 : index
    %c0_14 = arith.constant 0 : index
    %14 = vector.load %arg6[%c0_13, %c0_14] : memref<128x128xf32, #tpu.memory_space<vmem>>, vector<128x128xf32>
    %cst_15 = arith.constant dense<0.000000e+00> : vector<8x128xf32>
    %15 = tpu.matmul %12, %14, %cst_15 {dimension_numbers = #tpu.dot_dimension_numbers<[1], [0], [0], [1], [0, 0, 1, 1], [], []>} : vector<8x128xf32>, vector<128x128xf32>, vector<8x128xf32> -> vector<8x128xf32>
    %c0_16 = arith.constant 0 : index
    %c0_17 = arith.constant 0 : index
    %16 = vector.load %arg7[%c0_16, %c0_17] : memref<1x128xf32, #tpu.memory_space<vmem>>, vector<1x128xf32>
    %17 = vector.broadcast %16 : vector<1x128xf32> to vector<8x128xf32>
    %18 = arith.addf %15, %17 : vector<8x128xf32>
    %cst_18 = arith.constant 0.000000e+00 : f32
    %19 = vector.broadcast %cst_18 : f32 to vector<8x128xf32>
    %20 = arith.maximumf %18, %19 : vector<8x128xf32>
    %c0_19 = arith.constant 0 : index
    %c0_20 = arith.constant 0 : index
    %21 = vector.load %arg8[%c0_19, %c0_20] : memref<128x128xf32, #tpu.memory_space<vmem>>, vector<128x128xf32>
    %cst_21 = arith.constant dense<0.000000e+00> : vector<8x128xf32>
    %22 = tpu.matmul %20, %21, %cst_21 {dimension_numbers = #tpu.dot_dimension_numbers<[1], [0], [0], [1], [0, 0, 1, 1], [], []>} : vector<8x128xf32>, vector<128x128xf32>, vector<8x128xf32> -> vector<8x128xf32>
    %c0_22 = arith.constant 0 : index
    %c0_23 = arith.constant 0 : index
    %23 = vector.load %arg9[%c0_22, %c0_23] : memref<1x128xf32, #tpu.memory_space<vmem>>, vector<1x128xf32>
    %24 = vector.broadcast %23 : vector<1x128xf32> to vector<8x128xf32>
    %25 = arith.addf %22, %24 : vector<8x128xf32>
    %c0_24 = arith.constant 0 : index
    %c0_25 = arith.constant 0 : index
    %26 = vector.load %arg11[%c0_24, %c0_25] : memref<8x128xf32, #tpu.memory_space<vmem>>, vector<8x128xf32>
    tpu.vector_store %arg11[%c0_24, %c0_25], %25 {strides = array<i32>} : memref<8x128xf32, #tpu.memory_space<vmem>>, vector<8x128xf32>,
    return
  }
  func.func @transform_0(%arg0: i32) -> (i32, i32) {
    %c0_i32 = arith.constant 0 : i32
    %c0_i32_0 = arith.constant 0 : i32
    return %arg0, %c0_i32 : i32, i32
  }
  func.func @transform_1(%arg0: i32) -> (i32, i32) {
    %c0_i32 = arith.constant 0 : i32
    %c0_i32_0 = arith.constant 0 : i32
    %c0_i32_1 = arith.constant 0 : i32
    return %c0_i32, %c0_i32_0 : i32, i32
  }
  func.func @transform_2(%arg0: i32) -> (i32, i32) {
    %c0_i32 = arith.constant 0 : i32
    %c0_i32_0 = arith.constant 0 : i32
    %c0_i32_1 = arith.constant 0 : i32
    return %c0_i32, %c0_i32_0 : i32, i32
  }
  func.func @transform_3(%arg0: i32) -> (i32, i32) {
    %c0_i32 = arith.constant 0 : i32
    %c0_i32_0 = arith.constant 0 : i32
    %c0_i32_1 = arith.constant 0 : i32
    return %c0_i32, %c0_i32_0 : i32, i32
  }
  func.func @transform_4(%arg0: i32) -> (i32, i32) {
    %c0_i32 = arith.constant 0 : i32
    %c0_i32_0 = arith.constant 0 : i32
    %c0_i32_1 = arith.constant 0 : i32
    return %c0_i32, %c0_i32_0 : i32, i32
  }
  func.func @transform_5(%arg0: i32) -> (i32, i32) {
    %c0_i32 = arith.constant 0 : i32
    %c0_i32_0 = arith.constant 0 : i32
    %c0_i32_1 = arith.constant 0 : i32
    return %c0_i32, %c0_i32_0 : i32, i32
  }
  func.func @transform_6(%arg0: i32) -> (i32, i32) {
    %c0_i32 = arith.constant 0 : i32
    %c0_i32_0 = arith.constant 0 : i32
    %c0_i32_1 = arith.constant 0 : i32
    return %c0_i32, %c0_i32_0 : i32, i32
  }
  func.func @transform_7(%arg0: i32) -> (i32, i32) {
    %c0_i32 = arith.constant 0 : i32
    %c0_i32_0 = arith.constant 0 : i32
    %c0_i32_1 = arith.constant 0 : i32
    return %c0_i32, %c0_i32_0 : i32, i32
  }
  func.func @transform_8(%arg0: i32) -> (i32, i32) {
    %c0_i32 = arith.constant 0 : i32
    %c0_i32_0 = arith.constant 0 : i32
    %c0_i32_1 = arith.constant 0 : i32
    return %c0_i32, %c0_i32_0 : i32, i32
  }
  func.func @transform_9(%arg0: i32) -> (i32, i32) {
    %c0_i32 = arith.constant 0 : i32
    %c0_i32_0 = arith.constant 0 : i32
    return %arg0, %c0_i32 : i32, i32
  }
  func.func @transform_10(%arg0: i32) -> (i32, i32) {
    %c0_i32 = arith.constant 0 : i32
    %c0_i32_0 = arith.constant 0 : i32
    return %arg0, %c0_i32 : i32, i32
  }
}

</mosaic_0001>

<bundles_post_ra>
// kernel: tpu_custom_call.1
= control target key start
LH: loop header
LB: loop body
LE: loop exit
PB: predicated region body
PF: predicated region fallthrough
CT: control target
= control target key end

     0   :  { %16 = vsyncpa [#allocation3], 0  ;;  %s1066_s0 = inlined_call_operand.hbm [shape: f32[8,128], index: 0, kind: input, shape index: {}]   ;;  %s1067_s1 = inlined_call_operand.hbm [shape: f32[128,128], index: 1, kind: input, shape index: {}]   ;;  %s1068_s2 = inlined_call_operand.vmem [shape: f32[1,128], index: 2, kind: input, shape index: {}]   ;;  %s1069_s3 = inlined_call_operand.hbm [shape: f32[128,128], index: 3, kind: input, shape index: {}]   ;;  %s1070_s4 = inlined_call_operand.vmem [shape: f32[1,128], index: 4, kind: input, shape index: {}]   ;;  %s1071_s5 = inlined_call_operand.hbm [shape: f32[128,128], index: 5, kind: input, shape index: {}]   ;;  %s1072_s6 = inlined_call_operand.vmem [shape: f32[1,128], index: 6, kind: input, shape index: {}]   ;;  %s1073_s7 = inlined_call_operand.hbm [shape: f32[128,128], index: 7, kind: input, shape index: {}]   ;;  %s1074_s8 = inlined_call_operand.vmem [shape: f32[1,128], index: 8, kind: input, shape index: {}]   ;;  %s1075_s9 = inlined_call_operand.hbm [shape: f32[8,128], index: 9, kind: output, shape index: {0}]   ;;  %s1076_s10 = inlined_call_operand.hbm [shape: f32[8,128], index: 10, kind: output, shape index: {1}]  }
   0x1   :  { %17 = vsyncpa [#allocation6], 0 }
   0x2   :  { %18 = vsyncpa [#allocation9], 0 }
   0x3   :  { %19 = vsyncpa [#allocation4], 0 }
   0x4   :  { %20 = vsyncpa [#allocation13], 0  ;;  %s883_s13 = smov [#allocation5]  }
   0x5   :  { %s36_s14 = sshll.u32 %s883_s13, 4  ;;  %s37_s14 = int_to_ptr.vmem [resolvable:$true] %s36_s14 }
   0x6   :  { %s741_s15 = scalar_lea.vmem %s37_s14, 2048  ;;  %p746_p1 = scmp.lt.s32.totalorder %s37_s14, %s37_s14 }
   0x7   :  { %p742_p0 = scmp.ne.s32.totalorder %s37_s14, %s741_s15  ;;  %p747_p2 = scmp.lt.s32.totalorder %s741_s15, %s741_s15 }
   0x9   :  { %p748_p3 = por %p747_p2, %p746_p1 }
   0xb   :  { %p749_p4 = pnand %p748_p3, %p742_p0 }
   0xd   :  { %752 = shalt.err (!%p749_p4)
}
   0xe   :  { %s884_s16 = smov 128   ;;  %s885_s17 = smov 8  }
   0xf   :  { %42 = dma.hbm_to_vmem [thread:$0]  %s1067_s1, 2048, %s37_s14, [#allocation6], %s884_s16, %s884_s16, %s885_s17  }
  0x10   :  { %s886_s20 = smov [#allocation8]   ;;  %s887_s22 = smov [#allocation2]  }
  0x11   :  { %s64_s21 = sshll.u32 %s886_s20, 4  ;;  %s27_s23 = sshll.u32 %s887_s22, 4  ;;  %s65_s21 = int_to_ptr.vmem [resolvable:$true] %s64_s21  ;;  %s28_s23 = int_to_ptr.vmem [resolvable:$true] %s27_s23 }
  0x12   :  { %s761_s24 = scalar_lea.vmem %s65_s21, 2048  ;;  %p766_p6 = scmp.lt.s32.totalorder %s65_s21, %s65_s21 }
  0x13   :  { %p762_p5 = scmp.ne.s32.totalorder %s65_s21, %s761_s24  ;;  %p767_p7 = scmp.lt.s32.totalorder %s761_s24, %s761_s24 }
  0x15   :  { %p768_p8 = por %p767_p7, %p766_p6 }
  0x17   :  { %p769_p9 = pnand %p768_p8, %p762_p5 }
  0x19   :  { %772 = shalt.err (!%p769_p9)
}
  0x1a   :  { %70 = dma.hbm_to_vmem [thread:$0]  %s1071_s5, 2048, %s65_s21, [#allocation9], %s884_s16, %s884_s16, %s885_s17  }
  0x1b   :  { %s781_s1 = scalar_lea.vmem %s28_s23, 128  ;;  %p786_p11 = scmp.lt.s32.totalorder %s28_s23, %s28_s23 }
  0x1c   :  { %p782_p10 = scmp.ne.s32.totalorder %s28_s23, %s781_s1  ;;  %p787_p12 = scmp.lt.s32.totalorder %s781_s1, %s781_s1 }
  0x1e   :  { %p788_p13 = por %p787_p12, %p786_p11 }
  0x20   :  { %p789_p0 = pnand %p788_p13, %p782_p10 }
  0x22   :  { %792 = shalt.err (!%p789_p0)
}
  0x23   :  { %30 = dma.hbm_to_vmem [thread:$0]  %s1066_s0, 128, %s28_s23, [#allocation3]  }
  0x24   :  { %s888_s29 = smov [#allocation7]   ;;  %s889_s11 = smov [#allocation10]  }
  0x25   :  { %s50_s30 = sshll.u32 %s888_s29, 4  ;;  %s78_s12 = sshll.u32 %s889_s11, 4  ;;  %s51_s30 = int_to_ptr.vmem [resolvable:$true] %s50_s30  ;;  %s79_s12 = int_to_ptr.vmem [resolvable:$true] %s78_s12 }
  0x26   :  { %s801_s13 = scalar_lea.vmem %s51_s30, 2048  ;;  %p806_p2 = scmp.lt.s32.totalorder %s51_s30, %s51_s30 }
  0x27   :  { %p802_p1 = scmp.ne.s32.totalorder %s51_s30, %s801_s13  ;;  %p807_p3 = scmp.lt.s32.totalorder %s801_s13, %s801_s13 }
  0x29   :  { %p808_p4 = por %p807_p3, %p806_p2 }
  0x2b   :  { %p809_p5 = pnand %p808_p4, %p802_p1 }
  0x2d   :  { %812 = shalt.err (!%p809_p5)
}
  0x2e   :  { %56 = dma.hbm_to_vmem [thread:$0]  %s1069_s3, 2048, %s51_s30, [#allocation6], %s884_s16, %s884_s16, %s885_s17  }
  0x2f   :  { %s821_s0 = scalar_lea.vmem %s79_s12, 2048  ;;  %p826_p7 = scmp.lt.s32.totalorder %s79_s12, %s79_s12 }
  0x30   :  { %p822_p6 = scmp.ne.s32.totalorder %s79_s12, %s821_s0  ;;  %p827_p8 = scmp.lt.s32.totalorder %s821_s0, %s821_s0 }
  0x32   :  { %p828_p9 = por %p827_p8, %p826_p7 }
  0x34   :  { %p829_p10 = pnand %p828_p9, %p822_p6 }
  0x36   :  { %832 = shalt.err (!%p829_p10)
}
  0x37   :  { %84 = dma.hbm_to_vmem [thread:$0]  %s1073_s7, 2048, %s79_s12, [#allocation9], %s884_s16, %s884_s16, %s885_s17  }
  0x38   :  { %873 = dma.done.wait [#allocation3], 128  }
  0x39   :  { %874 = vsyncadd [#allocation3], 4294967168 }
  0x3a   :  { %875 = dma.done.wait [#allocation6], 4096  }
  0x3b   :  { %876 = vsyncadd [#allocation6], 4294963200 }
  0x3c   :  { %877 = dma.done.wait [#allocation9], 4096  }
  0x3d   :  { %878 = vsyncadd [#allocation9], 4294963200  ;;  %v890_v0 = vmov 0.0   ;;  %vm891_vm0 = vmmov 0   ;;  %v118_v1 = vld [vmem:[#allocation5 + $0x78] sm:$0xff]  ;;  %v117_v2 = vld [vmem:[#allocation5 + $0x70] sm:$0xff] }
  0x3e   :  { %582 = vmatprep.subr.mxu0 %v890_v0  ;;  %614 = vmatprep.mubr.msk.f32.mxu0 %vm891_vm0, %v890_v0  ;;  %v116_v3 = vld [vmem:[#allocation5 + $0x68] sm:$0xff]  ;;  %v115_v4 = vld [vmem:[#allocation5 + $0x60] sm:$0xff]  ;;  %v212_v5 = vld [vmem:[#allocation7 + $0x78] sm:$0xff] }
  0x3f   :  { %617 = vmatprep.subr.mxu1 %v890_v0  ;;  %649 = vmatprep.mubr.msk.f32.mxu1 %vm891_vm0, %v890_v0  ;;  %v114_v6 = vld [vmem:[#allocation5 + $0x58] sm:$0xff]  ;;  %v211_v7 = vld [vmem:[#allocation7 + $0x70] sm:$0xff]  ;;  %v210_v8 = vld [vmem:[#allocation7 + $0x68] sm:$0xff] }
  0x40   :  { %583 = vmatpush3.msra.mxu0 %v118_v1  ;;  %618 = vmatpush3.msra.mxu1 %v212_v5  ;;  %v113_v9 = vld [vmem:[#allocation5 + $0x50] sm:$0xff]  ;;  %v209_v10 = vld [vmem:[#allocation7 + $0x60] sm:$0xff]  ;;  %v112_v11 = vld [vmem:[#allocation5 + $0x48] sm:$0xff] }
  0x41   :  { %584 = vmatprep.subr.mxu0 %v890_v0  ;;  %619 = vmatprep.subr.mxu1 %v890_v0  ;;  %v208_v12 = vld [vmem:[#allocation7 + $0x58] sm:$0xff]  ;;  %v111_v13 = vld [vmem:[#allocation5 + $0x40] sm:$0xff]  ;;  %v207_v14 = vld [vmem:[#allocation7 + $0x50] sm:$0xff] }
  0x42   :  { %585 = vmatpush3.msra.mxu0 %v117_v2  ;;  %620 = vmatpush3.msra.mxu1 %v211_v7  ;;  %v110_v15 = vld [vmem:[#allocation5 + $0x38] sm:$0xff]  ;;  %v206_v16 = vld [vmem:[#allocation7 + $0x48] sm:$0xff]  ;;  %v109_v17 = vld [vmem:[#allocation5 + $0x30] sm:$0xff] }
  0x43   :  { %586 = vmatprep.subr.mxu0 %v890_v0  ;;  %621 = vmatprep.subr.mxu1 %v890_v0  ;;  %v205_v18 = vld [vmem:[#allocation7 + $0x40] sm:$0xff]  ;;  %v108_v19 = vld [vmem:[#allocation5 + $0x28] sm:$0xff]  ;;  %v204_v20 = vld [vmem:[#allocation7 + $0x38] sm:$0xff] }
  0x44   :  { %587 = vmatpush3.msra.mxu0 %v116_v3  ;;  %622 = vmatpush3.msra.mxu1 %v210_v8  ;;  %v107_v21 = vld [vmem:[#allocation5 + $0x20] sm:$0xff]  ;;  %v203_v22 = vld [vmem:[#allocation7 + $0x30] sm:$0xff]  ;;  %v106_v23 = vld [vmem:[#allocation5 + $0x18] sm:$0xff] }
  0x45   :  { %588 = vmatprep.subr.mxu0 %v890_v0  ;;  %623 = vmatprep.subr.mxu1 %v890_v0  ;;  %v202_v24 = vld [vmem:[#allocation7 + $0x28] sm:$0xff]  ;;  %v105_v25 = vld [vmem:[#allocation5 + $0x10] sm:$0xff]  ;;  %v201_v26 = vld [vmem:[#allocation7 + $0x20] sm:$0xff] }
  0x46   :  { %589 = vmatpush3.msra.mxu0 %v115_v4  ;;  %624 = vmatpush3.msra.mxu1 %v209_v10  ;;  %v104_v27 = vld [vmem:[#allocation5 + $0x8] sm:$0xff]  ;;  %v200_v28 = vld [vmem:[#allocation7 + $0x18] sm:$0xff]  ;;  %v103_v29 = vld [vmem:[#allocation5] sm:$0xff] }
  0x47   :  { %590 = vmatprep.subr.mxu0 %v890_v0  ;;  %625 = vmatprep.subr.mxu1 %v890_v0  ;;  %v102_v30 = vld [vmem:[#allocation2] sm:$0xff]  ;;  %v199_v31 = vld [vmem:[#allocation7 + $0x10] sm:$0xff]  ;;  %v198_v32 = vld [vmem:[#allocation7 + $0x8] sm:$0xff] }
  0x48   :  { %591 = vmatpush3.msra.mxu0 %v114_v6  ;;  %626 = vmatpush3.msra.mxu1 %v208_v12  ;;  %v197_v33 = vld [vmem:[#allocation7] sm:$0xff]  ;;  %v306_v34 = vld [vmem:[#allocation8 + $0x78] sm:$0xff]  ;;  %v305_v35 = vld [vmem:[#allocation8 + $0x70] sm:$0xff] }
  0x49   :  { %592 = vmatprep.subr.mxu0 %v890_v0  ;;  %627 = vmatprep.subr.mxu1 %v890_v0  ;;  %v304_v36 = vld [vmem:[#allocation8 + $0x68] sm:$0xff]  ;;  %v303_v37 = vld [vmem:[#allocation8 + $0x60] sm:$0xff]  ;;  %v302_v38 = vld [vmem:[#allocation8 + $0x58] sm:$0xff] }
  0x4a   :  { %593 = vmatpush3.msra.mxu0 %v113_v9  ;;  %628 = vmatpush3.msra.mxu1 %v207_v14  ;;  %v301_v39 = vld [vmem:[#allocation8 + $0x50] sm:$0xff]  ;;  %v300_v40 = vld [vmem:[#allocation8 + $0x48] sm:$0xff]  ;;  %v299_v41 = vld [vmem:[#allocation8 + $0x40] sm:$0xff] }
  0x4b   :  { %594 = vmatprep.subr.mxu0 %v890_v0  ;;  %629 = vmatprep.subr.mxu1 %v890_v0  ;;  %v298_v42 = vld [vmem:[#allocation8 + $0x38] sm:$0xff]  ;;  %v297_v43 = vld [vmem:[#allocation8 + $0x30] sm:$0xff]  ;;  %v296_v44 = vld [vmem:[#allocation8 + $0x28] sm:$0xff] }
  0x4c   :  { %595 = vmatpush3.msra.mxu0 %v112_v11  ;;  %630 = vmatpush3.msra.mxu1 %v206_v16  ;;  %v295_v45 = vld [vmem:[#allocation8 + $0x20] sm:$0xff]  ;;  %v294_v46 = vld [vmem:[#allocation8 + $0x18] sm:$0xff]  ;;  %v293_v47 = vld [vmem:[#allocation8 + $0x10] sm:$0xff] }
  0x4d   :  { %596 = vmatprep.subr.mxu0 %v890_v0  ;;  %631 = vmatprep.subr.mxu1 %v890_v0  ;;  %v510_v48 = vld [vmem:[%s1068_s2] ss:$0 sm:$0xff]  ;;  %v292_v53 = vld [vmem:[#allocation8 + $0x8] sm:$0xff]  ;;  %v291_v54 = vld [vmem:[#allocation8] sm:$0xff] }
  0x4e   :  { %597 = vmatpush3.msra.mxu0 %v111_v13  ;;  %632 = vmatpush3.msra.mxu1 %v205_v18  ;;  %v400_v55 = vld [vmem:[#allocation10 + $0x78] sm:$0xff]  ;;  %v399_v56 = vld [vmem:[#allocation10 + $0x70] sm:$0xff]  ;;  %v398_v57 = vld [vmem:[#allocation10 + $0x68] sm:$0xff] }
  0x4f   :  { %598 = vmatprep.subr.mxu0 %v890_v0  ;;  %633 = vmatprep.subr.mxu1 %v890_v0  ;;  %v397_v58 = vld [vmem:[#allocation10 + $0x60] sm:$0xff]  ;;  %v396_v59 = vld [vmem:[#allocation10 + $0x58] sm:$0xff]  ;;  %v395_v60 = vld [vmem:[#allocation10 + $0x50] sm:$0xff] }
  0x50   :  { %599 = vmatpush3.msra.mxu0 %v110_v15  ;;  %634 = vmatpush3.msra.mxu1 %v204_v20  ;;  %v394_v61 = vld [vmem:[#allocation10 + $0x48] sm:$0xff]  ;;  %v393_v62 = vld [vmem:[#allocation10 + $0x40] sm:$0xff]  ;;  %v392_v63 = vld [vmem:[#allocation10 + $0x38] sm:$0xff] }
  0x51   :  { %600 = vmatprep.subr.mxu0 %v890_v0  ;;  %635 = vmatprep.subr.mxu1 %v890_v0  ;;  %v391_v1 = vld [vmem:[#allocation10 + $0x30] sm:$0xff]  ;;  %v390_v2 = vld [vmem:[#allocation10 + $0x28] sm:$0xff]  ;;  %v389_v3 = vld [vmem:[#allocation10 + $0x20] sm:$0xff] }
  0x52   :  { %601 = vmatpush3.msra.mxu0 %v109_v17  ;;  %636 = vmatpush3.msra.mxu1 %v203_v22  ;;  %v388_v4 = vld [vmem:[#allocation10 + $0x18] sm:$0xff]  ;;  %v387_v9 = vld [vmem:[#allocation10 + $0x10] sm:$0xff]  ;;  %v386_v10 = vld [vmem:[#allocation10 + $0x8] sm:$0xff] }
  0x53   :  { %602 = vmatprep.subr.mxu0 %v890_v0  ;;  %637 = vmatprep.subr.mxu1 %v890_v0  ;;  %v511_v5 = vld [vmem:[%s1070_s4] ss:$0 sm:$0xff]  ;;  %v385_v11 = vld [vmem:[#allocation10] sm:$0xff]  ;;  %s892_s4 = smov [#allocation11]  }
  0x54   :  { %603 = vmatpush3.msra.mxu0 %v108_v19  ;;  %638 = vmatpush3.msra.mxu1 %v202_v24  ;;  %v512_v12 = vld [vmem:[%s1072_s6] ss:$0 sm:$0xff]  ;;  %s485_s20 = sshll.u32 %s892_s4, 4  ;;  %s486_s20 = int_to_ptr.vmem [resolvable:$true] %s485_s20 }
  0x55   :  { %604 = vmatprep.subr.mxu0 %v890_v0  ;;  %639 = vmatprep.subr.mxu1 %v890_v0  ;;  %s833_s21 = scalar_lea.vmem %s486_s20, 128  ;;  %p838_p12 = scmp.lt.s32.totalorder %s486_s20, %s486_s20 }
  0x56   :  { %605 = vmatpush3.msra.mxu0 %v107_v21  ;;  %640 = vmatpush3.msra.mxu1 %v201_v26  ;;  %p834_p11 = scmp.ne.s32.totalorder %s486_s20, %s833_s21  ;;  %p839_p13 = scmp.lt.s32.totalorder %s833_s21, %s833_s21 }
  0x57   :  { %606 = vmatprep.subr.mxu0 %v890_v0  ;;  %641 = vmatprep.subr.mxu1 %v890_v0 }
  0x58   :  { %607 = vmatpush3.msra.mxu0 %v106_v23  ;;  %642 = vmatpush3.msra.mxu1 %v200_v28  ;;  %p840_p0 = por %p839_p13, %p838_p12 }
  0x59   :  { %608 = vmatprep.subr.mxu0 %v890_v0  ;;  %643 = vmatprep.subr.mxu1 %v890_v0 }
  0x5a   :  { %609 = vmatpush3.msra.mxu0 %v105_v25  ;;  %644 = vmatpush3.msra.mxu1 %v199_v31  ;;  %p841_p1 = pnand %p840_p0, %p834_p11 }
  0x5b   :  { %610 = vmatprep.subr.mxu0 %v890_v0  ;;  %645 = vmatprep.subr.mxu1 %v890_v0 }
  0x5c   :  { %611 = vmatpush3.msra.mxu0 %v104_v27  ;;  %646 = vmatpush3.msra.mxu1 %v198_v32 }
  0x5d   :  { %612 = vmatprep.subr.mxu0 %v890_v0  ;;  %647 = vmatprep.subr.mxu1 %v890_v0 }
  0x5e   :  { %613 = vmatpush3.msra.mxu0 %v103_v29  ;;  %648 = vmatpush3.msra.mxu1 %v197_v33 }
  0x5f   :  { %615 = vmatmul.mubr.f32.vlgmr.msra.gmra.mxu0 %v102_v30  ;;  %652 = vmatprep.subr.mxu0 %v890_v0 }
  0x60   :  { %684 = vmatprep.mubr.msk.f32.mxu0 %vm891_vm0, %v890_v0  ;;  %687 = vmatprep.subr.mxu1 %v890_v0 }
  0x61   :  { %653 = vmatpush3.msra.mxu0 %v306_v34 }
  0x62   :  { %654 = vmatprep.subr.mxu0 %v890_v0 }
  0x63   :  { %655 = vmatpush3.msra.mxu0 %v305_v35 }
  0x64   :  { %656 = vmatprep.subr.mxu0 %v890_v0 }
  0x65   :  { %657 = vmatpush3.msra.mxu0 %v304_v36 }
  0x66   :  { %658 = vmatprep.subr.mxu0 %v890_v0 }
  0x67   :  { %659 = vmatpush3.msra.mxu0 %v303_v37 }
  0x68   :  { %660 = vmatprep.subr.mxu0 %v890_v0 }
  0x69   :  { %661 = vmatpush3.msra.mxu0 %v302_v38 }
  0x6a   :  { %662 = vmatprep.subr.mxu0 %v890_v0 }
  0x6b   :  { %663 = vmatpush3.msra.mxu0 %v301_v39 }
  0x6c   :  { %664 = vmatprep.subr.mxu0 %v890_v0 }
  0x6d   :  { %665 = vmatpush3.msra.mxu0 %v300_v40 }
  0x6e   :  { %666 = vmatprep.subr.mxu0 %v890_v0 }
  0x6f   :  { %667 = vmatpush3.msra.mxu0 %v299_v41 }
  0x70   :  { %668 = vmatprep.subr.mxu0 %v890_v0 }
  0x71   :  { %669 = vmatpush3.msra.mxu0 %v298_v42 }
  0x72   :  { %670 = vmatprep.subr.mxu0 %v890_v0 }
  0x73   :  { %671 = vmatpush3.msra.mxu0 %v297_v43 }
  0x74   :  { %672 = vmatprep.subr.mxu0 %v890_v0 }
  0x75   :  { %673 = vmatpush3.msra.mxu0 %v296_v44 }
  0x76   :  { %674 = vmatprep.subr.mxu0 %v890_v0 }
  0x77   :  { %675 = vmatpush3.msra.mxu0 %v295_v45 }
  0x78   :  { %676 = vmatprep.subr.mxu0 %v890_v0 }
  0x79   :  { %677 = vmatpush3.msra.mxu0 %v294_v46 }
  0x7a   :  { %678 = vmatprep.subr.mxu0 %v890_v0 }
  0x7b   :  { %679 = vmatpush3.msra.mxu0 %v293_v47 }
  0x7c   :  { %680 = vmatprep.subr.mxu0 %v890_v0 }
  0x7d   :  { %681 = vmatpush3.msra.mxu0 %v292_v53 }
  0x7e   :  { %682 = vmatprep.subr.mxu0 %v890_v0 }
  0x7f   :  { %683 = vmatpush3.msra.mxu0 %v291_v54 }
 0x11f   :  { %v192_v49 = vpop.f32.mrf.mxu0 }
 0x120   :  { %v193_v50 = vadd.f32 %v510_v48, %v192_v49 }
 0x121   :  { %v616_v51 = vpop.f32.mrf.mxu0 }
 0x122   :  { %v196_v52 = vmax.f32 %v193_v50, 0.0 }
 0x124   :  { %650 = vmatmul.mubr.f32.vlgmr.msra.gmra.mxu1 %v196_v52 }
 0x125   :  { %719 = vmatprep.mubr.msk.f32.mxu1 %vm891_vm0, %v890_v0  ;;  %688 = vmatpush3.msra.mxu1 %v400_v55 }
 0x126   :  { %689 = vmatprep.subr.mxu1 %v890_v0 }
 0x127   :  { %690 = vmatpush3.msra.mxu1 %v399_v56 }
 0x128   :  { %691 = vmatprep.subr.mxu1 %v890_v0 }
 0x129   :  { %692 = vmatpush3.msra.mxu1 %v398_v57 }
 0x12a   :  { %693 = vmatprep.subr.mxu1 %v890_v0 }
 0x12b   :  { %694 = vmatpush3.msra.mxu1 %v397_v58 }
 0x12c   :  { %695 = vmatprep.subr.mxu1 %v890_v0 }
 0x12d   :  { %696 = vmatpush3.msra.mxu1 %v396_v59 }
 0x12e   :  { %697 = vmatprep.subr.mxu1 %v890_v0 }
 0x12f   :  { %698 = vmatpush3.msra.mxu1 %v395_v60 }
 0x130   :  { %699 = vmatprep.subr.mxu1 %v890_v0 }
 0x131   :  { %700 = vmatpush3.msra.mxu1 %v394_v61 }
 0x132   :  { %701 = vmatprep.subr.mxu1 %v890_v0 }
 0x133   :  { %702 = vmatpush3.msra.mxu1 %v393_v62 }
 0x134   :  { %703 = vmatprep.subr.mxu1 %v890_v0 }
 0x135   :  { %704 = vmatpush3.msra.mxu1 %v392_v63 }
 0x136   :  { %705 = vmatprep.subr.mxu1 %v890_v0 }
 0x137   :  { %706 = vmatpush3.msra.mxu1 %v391_v1 }
 0x138   :  { %707 = vmatprep.subr.mxu1 %v890_v0 }
 0x139   :  { %708 = vmatpush3.msra.mxu1 %v390_v2 }
 0x13a   :  { %709 = vmatprep.subr.mxu1 %v890_v0 }
 0x13b   :  { %710 = vmatpush3.msra.mxu1 %v389_v3 }
 0x13c   :  { %711 = vmatprep.subr.mxu1 %v890_v0 }
 0x13d   :  { %712 = vmatpush3.msra.mxu1 %v388_v4 }
 0x13e   :  { %713 = vmatprep.subr.mxu1 %v890_v0 }
 0x13f   :  { %714 = vmatpush3.msra.mxu1 %v387_v9 }
 0x140   :  { %715 = vmatprep.subr.mxu1 %v890_v0 }
 0x141   :  { %716 = vmatpush3.msra.mxu1 %v386_v10 }
 0x142   :  { %717 = vmatprep.subr.mxu1 %v890_v0 }
 0x143   :  { %718 = vmatpush3.msra.mxu1 %v385_v11 }
 0x1e4   :  { %v286_v6 = vpop.f32.mrf.mxu1 }
 0x1e5   :  { %v287_v7 = vadd.f32 %v511_v5, %v286_v6 }
 0x1e6   :  { %v651_v8 = vpop.f32.mrf.mxu1 }
 0x1e7   :  { %290 = vst [vmem:[#allocation11] sm:$0xff] %v287_v7  ;;  %685 = vmatmul.mubr.f32.vlgmr.msra.gmra.mxu0 %v287_v7 }
 0x2a7   :  { %v380_v13 = vpop.f32.mrf.mxu0 }
 0x2a8   :  { %v381_v14 = vadd.f32 %v512_v12, %v380_v13 }
 0x2a9   :  { %v686_v15 = vpop.f32.mrf.mxu0 }
 0x2aa   :  { %v384_v16 = vmax.f32 %v381_v14, 0.0 }
 0x2ac   :  { %720 = vmatmul.mubr.f32.vlgmr.msra.gmra.mxu1 %v384_v16 }
 0x2ad   :  { %844 = shalt.err (!%p841_p1)
}
 0x2ae   :  { %488 = dma.vmem_to_hbm [thread:$0]  %s486_s20, 128, %s1075_s9, [#allocation4]   ;;  %v513_v0 = vld [vmem:[%s1074_s8] ss:$0 sm:$0xff] }
 0x2af   :  { %s893_s25 = smov [#allocation12]  }
 0x2b0   :  { %s495_s26 = sshll.u32 %s893_s25, 4  ;;  %s496_s26 = int_to_ptr.vmem [resolvable:$true] %s495_s26 }
 0x2b1   :  { %s853_s1 = scalar_lea.vmem %s496_s26, 128  ;;  %p858_p3 = scmp.lt.s32.totalorder %s496_s26, %s496_s26 }
 0x2b2   :  { %p854_p2 = scmp.ne.s32.totalorder %s496_s26, %s853_s1  ;;  %p859_p4 = scmp.lt.s32.totalorder %s853_s1, %s853_s1 }
 0x2b4   :  { %p860_p5 = por %p859_p4, %p858_p3 }
 0x2b6   :  { %p861_p6 = pnand %p860_p5, %p854_p2 }
 0x36c   :  { %v474_v17 = vpop.f32.mrf.mxu1 }
 0x36d   :  { %v475_v18 = vadd.f32 %v513_v0, %v474_v17 }
 0x36e   :  { %v721_v19 = vpop.f32.mrf.mxu1 }
 0x36f   :  { %478 = vst [vmem:[#allocation12] sm:$0xff] %v475_v18 }
 0x370   :  { %864 = shalt.err (!%p861_p6)
}
 0x371   :  { %498 = dma.vmem_to_hbm [thread:$0]  %s496_s26, 128, %s1076_s10, [#allocation13]  }
 0x372   :  { %879 = dma.done.wait [#allocation4], 128  }
 0x373   :  { %880 = vsyncadd [#allocation4], 4294967168 }
 0x374   :  { %881 = dma.done.wait [#allocation13], 128  }
 0x375   :  { %882 = vsyncadd [#allocation13], 4294967168 }
 0x376   :  { %505 = vsyncpa [#allocation3], 1 }
 0x377   :  { %506 = vsyncpa [#allocation6], 1 }
 0x378   :  { %507 = vsyncpa [#allocation9], 1 }
 0x379   :  { %508 = vsyncpa [#allocation4], 1 }
 0x37a   :  { %509 = vsyncpa [#allocation13], 1 }

</bundles_post_ra>
